<compile_context>
chip_gen: v7x
topology: tpu7x:2x2x1
jax: 0.10.0
libtpu: 0.0.40
codegen_flags: <defaults>
</compile_context>

<pallas_src>
import functools

import jax
import jax.numpy as jnp
from jax.experimental import pallas as pl
from jax.experimental.pallas import tpu as pltpu


def _round_up(n, m):
    return ((n + m - 1) // m) * m


def mlp_kernel(x_ref, w1_ref, b1_ref, w2_ref, b2_ref, o_ref):
    # hidden = ReLU(x @ W1 + b1); bf16 MXU inputs, f32 accumulation.
    h = jnp.dot(x_ref[...], w1_ref[...], preferred_element_type=jnp.float32)
    h = jnp.maximum(h + b1_ref[...], 0.0)                 # bias + ReLU in f32 (VPU)
    # Dropout(p=0.0) == identity.
    out = jnp.dot(h.astype(w2_ref.dtype), w2_ref[...],
                  preferred_element_type=jnp.float32)
    out = out + b2_ref[...]
    o_ref[...] = out.astype(o_ref.dtype)


@functools.partial(jax.jit, static_argnames=("block_b",))
def mlp_forward(x, w1, b1, w2, b2, *, block_b=256):
    """x: (B, in), w1: (in, hidden), b1: (1, hidden), w2: (hidden, out), b2: (1, out).

    Implements y = W2(ReLU(W1 x + b1)) + b2 (dropout p=0 is identity).
    Weights are stored pre-transposed as (in_features, out_features), matching
    PyTorch nn.Linear semantics y = x @ W.T + b.
    """
    B, d_in = x.shape
    hidden = w1.shape[1]
    d_out = w2.shape[1]
    out_dtype = x.dtype

    b1 = b1.reshape(1, hidden)
    b2 = b2.reshape(1, d_out)

    # ---- pad feature dims to 128-lane multiples; batch to a multiple of the row tile
    d_in_p = _round_up(d_in, 128)
    hid_p = _round_up(hidden, 128)
    d_out_p = _round_up(d_out, 128)

    tb = min(block_b, _round_up(B, 16))   # 16 = bf16 sublane packing
    b_pad = _round_up(B, tb)
    n_blocks = b_pad // tb

    xp = jnp.pad(x, ((0, b_pad - B), (0, d_in_p - d_in))).astype(jnp.bfloat16)
    w1p = jnp.pad(w1, ((0, d_in_p - d_in), (0, hid_p - hidden))).astype(jnp.bfloat16)
    w2p = jnp.pad(w2, ((0, hid_p - hidden), (0, d_out_p - d_out))).astype(jnp.bfloat16)
    b1p = jnp.pad(b1, ((0, 0), (0, hid_p - hidden))).astype(jnp.float32)
    b2p = jnp.pad(b2, ((0, 0), (0, d_out_p - d_out))).astype(jnp.float32)

    # ---- VMEM budget: double-buffered activation tiles + resident weights + headroom
    est = (2 * tb * d_in_p * 2            # x tiles (bf16, double-buffered)
           + 2 * d_in_p * hid_p * 2       # W1 (bf16)
           + 2 * hid_p * d_out_p * 2      # W2 (bf16)
           + 2 * (hid_p + d_out_p) * 4    # biases (f32)
           + 2 * tb * d_out_p * 4         # out tiles
           + tb * hid_p * 4)              # f32 hidden intermediate
    vmem_limit = int(min(max(2 * est, 32 * 1024 * 1024), 64 * 1024 * 1024))

    cost = pl.CostEstimate(
        flops=2 * b_pad * (d_in_p * hid_p + hid_p * d_out_p),
        bytes_accessed=(xp.size * 2 + w1p.size * 2 + w2p.size * 2
                        + b1p.size * 4 + b2p.size * 4
                        + b_pad * d_out_p * jnp.dtype(out_dtype).itemsize),
        transcendentals=0,
    )

    out_padded = pl.pallas_call(
        mlp_kernel,
        out_shape=jax.ShapeDtypeStruct((b_pad, d_out_p), out_dtype),
        grid=(n_blocks,),
        in_specs=[
            pl.BlockSpec((tb, d_in_p), lambda i: (i, 0)),      # x: batch-tiled
            pl.BlockSpec((d_in_p, hid_p), lambda i: (0, 0)),   # W1: VMEM-resident
            pl.BlockSpec((1, hid_p), lambda i: (0, 0)),        # b1: VMEM-resident
            pl.BlockSpec((hid_p, d_out_p), lambda i: (0, 0)),  # W2: VMEM-resident
            pl.BlockSpec((1, d_out_p), lambda i: (0, 0)),      # b2: VMEM-resident
        ],
        out_specs=pl.BlockSpec((tb, d_out_p), lambda i: (i, 0)),
        compiler_params=pltpu.CompilerParams(
            dimension_semantics=("parallel",),
            vmem_limit_bytes=vmem_limit,
        ),
        cost_estimate=cost,
    )(xp, w1p, b1p, w2p, b2p)

    return out_padded[:B, :d_out]


def init_mlp_params(key, input_size, hidden_size, output_size, dtype=jnp.float32):
    """Deterministic init mirroring nn.Linear's default U(-1/sqrt(fan_in), 1/sqrt(fan_in))."""
    k1, k2, k3, k4 = jax.random.split(key, 4)
    bound1 = 1.0 / (input_size ** 0.5)
    bound2 = 1.0 / (hidden_size ** 0.5)
    # stored transposed: (in_features, out_features)
    w1 = jax.random.uniform(k1, (input_size, hidden_size), dtype, -bound1, bound1)
    b1 = jax.random.uniform(k2, (1, hidden_size), dtype, -bound1, bound1)
    w2 = jax.random.uniform(k3, (hidden_size, output_size), dtype, -bound2, bound2)
    b2 = jax.random.uniform(k4, (1, output_size), dtype, -bound2, bound2)
    return w1, b1, w2, b2


if __name__ == "__main__":
    input_size, hidden_size, output_size = 32, 64, 16
    batch = 8

    key = jax.random.PRNGKey(0)
    kx, kp = jax.random.split(key)
    x = jax.random.normal(kx, (batch, input_size), jnp.float32)
    w1, b1, w2, b2 = init_mlp_params(kp, input_size, hidden_size, output_size)

    out = mlp_forward(x, w1, b1, w2, b2)
    jax.block_until_ready(out)

    # reference (pure JAX, f32); loose tolerance because the kernel uses bf16 MXU
    # inputs with f32 accumulation.
    ref = jnp.maximum(x @ w1 + b1, 0.0) @ w2 + b2
    assert out.shape == (batch, output_size)
    assert jnp.allclose(out, ref, atol=5e-2, rtol=5e-2), float(jnp.max(jnp.abs(out - ref)))

    print("KERNEL_OK")
</pallas_src>

<mosaic_0001>
module attributes {stable_mosaic.version = 11 : i64} {
  func.func @mlp_kernel(%arg0: i32, %arg1: memref<16x128xbf16, #tpu.memory_space<vmem>>, %arg2: memref<128x128xbf16, #tpu.memory_space<vmem>>, %arg3: memref<1x128xf32, #tpu.memory_space<vmem>>, %arg4: memref<128x128xbf16, #tpu.memory_space<vmem>>, %arg5: memref<1x128xf32, #tpu.memory_space<vmem>>, %arg6: memref<16x128xf32, #tpu.memory_space<vmem>>) attributes {dimension_semantics = [#tpu.dimension_semantics<parallel>], iteration_bounds = array<i64: 1>, scalar_prefetch = 0 : i64, scratch_operands = 0 : i64, tpu.core_type = #tpu.core_type<tc>, window_params = [{transform_indices = @transform_0, window_bounds = array<i64: 16, 128>}, {pipeline_mode = #tpu.pipeline_mode<synchronous>, transform_indices = @transform_1, window_bounds = array<i64: 128, 128>}, {pipeline_mode = #tpu.pipeline_mode<synchronous>, transform_indices = @transform_2, window_bounds = array<i64: 1, 128>}, {pipeline_mode = #tpu.pipeline_mode<synchronous>, transform_indices = @transform_3, window_bounds = array<i64: 128, 128>}, {pipeline_mode = #tpu.pipeline_mode<synchronous>, transform_indices = @transform_4, window_bounds = array<i64: 1, 128>}, {transform_indices = @transform_5, window_bounds = array<i64: 16, 128>}]} {
    %c0 = arith.constant 0 : index
    %c0_0 = arith.constant 0 : index
    %0 = vector.load %arg1[%c0, %c0_0] : memref<16x128xbf16, #tpu.memory_space<vmem>>, vector<16x128xbf16>
    %c0_1 = arith.constant 0 : index
    %c0_2 = arith.constant 0 : index
    %1 = vector.load %arg2[%c0_1, %c0_2] : memref<128x128xbf16, #tpu.memory_space<vmem>>, vector<128x128xbf16>
    %cst = arith.constant dense<0.000000e+00> : vector<16x128xf32>
    %2 = tpu.matmul %0, %1, %cst {dimension_numbers = #tpu.dot_dimension_numbers<[1], [0], [0], [1], [0, 0, 1, 1], [], []>} : vector<16x128xbf16>, vector<128x128xbf16>, vector<16x128xf32> -> vector<16x128xf32>
    %c0_3 = arith.constant 0 : index
    %c0_4 = arith.constant 0 : index
    %3 = vector.load %arg3[%c0_3, %c0_4] : memref<1x128xf32, #tpu.memory_space<vmem>>, vector<1x128xf32>
    %4 = vector.broadcast %3 : vector<1x128xf32> to vector<16x128xf32>
    %5 = arith.addf %2, %4 : vector<16x128xf32>
    %cst_5 = arith.constant 0.000000e+00 : f32
    %6 = vector.broadcast %cst_5 : f32 to vector<16x128xf32>
    %7 = arith.maximumf %5, %6 : vector<16x128xf32>
    %8 = arith.truncf %7 : vector<16x128xf32> to vector<16x128xbf16>
    %c0_6 = arith.constant 0 : index
    %c0_7 = arith.constant 0 : index
    %9 = vector.load %arg4[%c0_6, %c0_7] : memref<128x128xbf16, #tpu.memory_space<vmem>>, vector<128x128xbf16>
    %cst_8 = arith.constant dense<0.000000e+00> : vector<16x128xf32>
    %10 = tpu.matmul %8, %9, %cst_8 {dimension_numbers = #tpu.dot_dimension_numbers<[1], [0], [0], [1], [0, 0, 1, 1], [], []>} : vector<16x128xbf16>, vector<128x128xbf16>, vector<16x128xf32> -> vector<16x128xf32>
    %c0_9 = arith.constant 0 : index
    %c0_10 = arith.constant 0 : index
    %11 = vector.load %arg5[%c0_9, %c0_10] : memref<1x128xf32, #tpu.memory_space<vmem>>, vector<1x128xf32>
    %12 = vector.broadcast %11 : vector<1x128xf32> to vector<16x128xf32>
    %13 = arith.addf %10, %12 : vector<16x128xf32>
    %c0_11 = arith.constant 0 : index
    %c0_12 = arith.constant 0 : index
    %14 = vector.load %arg6[%c0_11, %c0_12] : memref<16x128xf32, #tpu.memory_space<vmem>>, vector<16x128xf32>
    tpu.vector_store %arg6[%c0_11, %c0_12], %13 {strides = array<i32>} : memref<16x128xf32, #tpu.memory_space<vmem>>, vector<16x128xf32>,
    return
  }
  func.func @transform_0(%arg0: i32) -> (i32, i32) {
    %c0_i32 = arith.constant 0 : i32
    %c0_i32_0 = arith.constant 0 : i32
    return %arg0, %c0_i32 : i32, i32
  }
  func.func @transform_1(%arg0: i32) -> (i32, i32) {
    %c0_i32 = arith.constant 0 : i32
    %c0_i32_0 = arith.constant 0 : i32
    %c0_i32_1 = arith.constant 0 : i32
    return %c0_i32, %c0_i32_0 : i32, i32
  }
  func.func @transform_2(%arg0: i32) -> (i32, i32) {
    %c0_i32 = arith.constant 0 : i32
    %c0_i32_0 = arith.constant 0 : i32
    %c0_i32_1 = arith.constant 0 : i32
    return %c0_i32, %c0_i32_0 : i32, i32
  }
  func.func @transform_3(%arg0: i32) -> (i32, i32) {
    %c0_i32 = arith.constant 0 : i32
    %c0_i32_0 = arith.constant 0 : i32
    %c0_i32_1 = arith.constant 0 : i32
    return %c0_i32, %c0_i32_0 : i32, i32
  }
  func.func @transform_4(%arg0: i32) -> (i32, i32) {
    %c0_i32 = arith.constant 0 : i32
    %c0_i32_0 = arith.constant 0 : i32
    %c0_i32_1 = arith.constant 0 : i32
    return %c0_i32, %c0_i32_0 : i32, i32
  }
  func.func @transform_5(%arg0: i32) -> (i32, i32) {
    %c0_i32 = arith.constant 0 : i32
    %c0_i32_0 = arith.constant 0 : i32
    return %arg0, %c0_i32 : i32, i32
  }
}

</mosaic_0001>

<bundles_post_ra>
// kernel: mlp_forward.1
= control target key start
LH: loop header
LB: loop body
LE: loop exit
PB: predicated region body
PF: predicated region fallthrough
CT: control target
= control target key end

     0   :  { %v358_v0 = vmov 0.0   ;;  %vm359_vm0 = vmmov 0   ;;  %s453_s1 = inlined_call_operand.vmem [shape: bf16[128,128], index: 1, kind: input, shape index: {}]   ;;  %s454_s3 = inlined_call_operand.vmem [shape: bf16[128,128], index: 3, kind: input, shape index: {}]   ;;  %s455_s0 = inlined_call_operand.vmem [shape: bf16[16,128], index: 0, kind: input, shape index: {}]   ;;  %s456_s2 = inlined_call_operand.vmem [shape: f32[1,128], index: 2, kind: input, shape index: {}]   ;;  %s457_s4 = inlined_call_operand.vmem [shape: f32[1,128], index: 4, kind: input, shape index: {}]   ;;  %s458_s5 = inlined_call_operand.vmem [shape: f32[16,128], index: 5, kind: output, shape index: {}]  }
   0x1   :  { %299 = vmatprep.subr.bf16.mxu0 %v358_v0  ;;  %v341_v1 = vld [vmem:[%s453_s1] sm:$0xff]   ;;  %315 = vmatprep.mubr.msk.bf16.mxu0 %vm359_vm0, %v358_v0  ;;  %v342_v2 = vld [vmem:[%s453_s1 + $0x8] sm:$0xff]   ;;  %v343_v3 = vld [vmem:[%s453_s1 + $0x10] sm:$0xff]  }
   0x2   :  { %319 = vmatprep.subr.bf16.mxu1 %v358_v0  ;;  %335 = vmatprep.mubr.msk.bf16.mxu1 %vm359_vm0, %v358_v0  ;;  %v350_v4 = vld [vmem:[%s454_s3] sm:$0xff]   ;;  %v344_v5 = vld [vmem:[%s453_s1 + $0x18] sm:$0xff]   ;;  %v351_v6 = vld [vmem:[%s454_s3 + $0x8] sm:$0xff]  }
   0x3   :  { %300 = vmatpush3.bf16.msra.mxu0 %v341_v1  ;;  %320 = vmatpush3.bf16.msra.mxu1 %v350_v4  ;;  %v345_v7 = vld [vmem:[%s453_s1 + $0x20] sm:$0xff]   ;;  %v352_v8 = vld [vmem:[%s454_s3 + $0x10] sm:$0xff]   ;;  %v346_v9 = vld [vmem:[%s453_s1 + $0x28] sm:$0xff]  }
   0x4   :  { %301 = vmatprep.subr.bf16.mxu0 %v358_v0  ;;  %321 = vmatprep.subr.bf16.mxu1 %v358_v0  ;;  %v353_v10 = vld [vmem:[%s454_s3 + $0x18] sm:$0xff]   ;;  %v347_v11 = vld [vmem:[%s453_s1 + $0x30] sm:$0xff]   ;;  %v354_v12 = vld [vmem:[%s454_s3 + $0x20] sm:$0xff]  }
   0x5   :  { %v348_v13 = vld [vmem:[%s453_s1 + $0x38] sm:$0xff]   ;;  %v355_v14 = vld [vmem:[%s454_s3 + $0x28] sm:$0xff]   ;;  %v349_v15 = vld [vmem:[%s455_s0] sm:$0xff]  }
   0x6   :  { %v356_v16 = vld [vmem:[%s454_s3 + $0x30] sm:$0xff]   ;;  %v357_v17 = vld [vmem:[%s454_s3 + $0x38] sm:$0xff]   ;;  %v262_v18 = vld [vmem:[%s456_s2] ss:$0 sm:$0xff] }
   0x7   :  { %302 = vmatpush3.bf16.msra.mxu0 %v342_v2  ;;  %322 = vmatpush3.bf16.msra.mxu1 %v351_v6  ;;  %v272_v28 = vld [vmem:[%s457_s4] ss:$0 sm:$0xff] }
   0x8   :  { %303 = vmatprep.subr.bf16.mxu0 %v358_v0  ;;  %323 = vmatprep.subr.bf16.mxu1 %v358_v0 }
   0xb   :  { %304 = vmatpush3.bf16.msra.mxu0 %v343_v3  ;;  %324 = vmatpush3.bf16.msra.mxu1 %v352_v8 }
   0xc   :  { %305 = vmatprep.subr.bf16.mxu0 %v358_v0  ;;  %325 = vmatprep.subr.bf16.mxu1 %v358_v0 }
   0xf   :  { %306 = vmatpush3.bf16.msra.mxu0 %v344_v5  ;;  %326 = vmatpush3.bf16.msra.mxu1 %v353_v10 }
  0x10   :  { %307 = vmatprep.subr.bf16.mxu0 %v358_v0  ;;  %327 = vmatprep.subr.bf16.mxu1 %v358_v0 }
  0x13   :  { %308 = vmatpush3.bf16.msra.mxu0 %v345_v7  ;;  %328 = vmatpush3.bf16.msra.mxu1 %v354_v12 }
  0x14   :  { %309 = vmatprep.subr.bf16.mxu0 %v358_v0  ;;  %329 = vmatprep.subr.bf16.mxu1 %v358_v0 }
  0x17   :  { %310 = vmatpush3.bf16.msra.mxu0 %v346_v9  ;;  %330 = vmatpush3.bf16.msra.mxu1 %v355_v14 }
  0x18   :  { %311 = vmatprep.subr.bf16.mxu0 %v358_v0  ;;  %331 = vmatprep.subr.bf16.mxu1 %v358_v0 }
  0x1b   :  { %312 = vmatpush3.bf16.msra.mxu0 %v347_v11  ;;  %332 = vmatpush3.bf16.msra.mxu1 %v356_v16 }
  0x1c   :  { %313 = vmatprep.subr.bf16.mxu0 %v358_v0  ;;  %333 = vmatprep.subr.bf16.mxu1 %v358_v0 }
  0x1f   :  { %314 = vmatpush3.bf16.msra.mxu0 %v348_v13  ;;  %334 = vmatpush3.bf16.msra.mxu1 %v357_v17 }
  0x22   :  { %316 = vmatmul.mubr.bf16.vlgmr.msra.gmra.mrb[0].mxu0 %v349_v15 }
  0xf5   :  { %v134_v19 = vpop.f32.mrb[0].mxu0 }
  0xf6   :  { %v135_v20 = vadd.f32 %v262_v18, %v134_v19  ;;  %v317_v21 = vpop.f32.mrb[1].mxu0 }
  0xf7   :  { %v137_v22 = vpop.f32.mrb[2].mxu0 }
  0xf8   :  { %v138_v23 = vadd.f32 %v262_v18, %v137_v22  ;;  %v318_v24 = vpop.f32.mrb[3].mxu0  ;;  %v141_v25 = vmax.f32 %v135_v20, 0.0 }
  0xfa   :  { %v142_v26 = vmax.f32 %v138_v23, 0.0 }
  0xfc   :  { %v143_v27 = vpack.c.bf16 %v142_v26, %v141_v25 }
  0xfe   :  { %336 = vmatmul.mubr.bf16.vlgmr.msra.gmra.mrb[0].mxu1 %v143_v27 }
 0x1d1   :  { %v249_v29 = vpop.f32.mrb[0].mxu1 }
 0x1d2   :  { %v250_v30 = vadd.f32 %v272_v28, %v249_v29  ;;  %v337_v31 = vpop.f32.mrb[1].mxu1 }
 0x1d3   :  { %v252_v32 = vpop.f32.mrb[2].mxu1 }
 0x1d4   :  { %256 = vst [vmem:[%s458_s5] sm:$0xff] %v250_v30  ;;  %v253_v33 = vadd.f32 %v272_v28, %v252_v32  ;;  %v338_v34 = vpop.f32.mrb[3].mxu1 }
 0x1d6   :  { %257 = vst [vmem:[%s458_s5 + $0x8] sm:$0xff] %v253_v33 }

</bundles_post_ra>
